<compile_context>
chip_gen: v7x
topology: tpu7x:2x2x1
jax: 0.10.0
libtpu: 0.0.40
codegen_flags: <defaults>
</compile_context>

<pallas_src>
import jax
import jax.numpy as jnp
from jax.experimental import pallas as pl
from jax.experimental.pallas import tpu as pltpu

_LANE = 128
# ~4 MiB per block: near the HBM roofline on v6e/v7x, still cheap on v5e.
# Double-buffered in+out blocks = 4x block = 16 MiB, which we cover with an
# explicit vmem_limit_bytes below instead of relying on per-chip defaults.
_TARGET_BLOCK_BYTES = 4 * 1024 * 1024
_FALLBACK_VMEM_LIMIT_BYTES = 32 * 1024 * 1024


def _copy_kernel(x_ref, o_ref):
    # Pure identity copy of one lane-dense (tile_rows, lanes) block.
    o_ref[...] = x_ref[...]


def _sublane_for_itemsize(itemsize):
    # Sub-32-bit dtypes pack along sublanes: native tiles are (8,128) for
    # 32-bit, (16,128) for 16-bit, (32,128) for 8-bit elements.
    return {4: 8, 2: 16, 1: 32}.get(itemsize, 8)


def _vmem_limit_bytes():
    """Explicit scoped-VMEM limit with headroom on every chip generation."""
    try:
        cap = pltpu.get_tpu_info().vmem_capacity_bytes
        # v5e/v6e (128 MiB physical) -> 64 MiB; v7x (64 MiB physical) -> 32 MiB.
        return int(min(64 * 1024 * 1024, cap // 2))
    except Exception:
        # Hardware query unavailable: 32 MiB is safe on all listed chips and
        # well above the 16 MiB needed by 4 MiB double-buffered in+out blocks.
        return _FALLBACK_VMEM_LIMIT_BYTES


def _pick_2d_shape(total, sublane):
    """Lane-dense (rows, lanes) factorization of the flat element count.

    Prefers lanes as a large multiple of 128 with rows a multiple of the
    dtype-native sublane count so the copy moves full vregs with unmasked
    vld/vst; falls back to any multiple-of-128 lane width, or None if the
    element count is not divisible by 128.
    """
    fallback = None
    for lanes in (8192, 4096, 2048, 1024, 512, 256, 128):
        if total % lanes:
            continue
        rows = total // lanes
        if rows % sublane == 0:
            return rows, lanes
        if fallback is None:
            fallback = (rows, lanes)
    return fallback


def _pick_tile_rows(rows, lanes, itemsize, sublane):
    """Sublane-multiple tile near the ~4 MiB budget; rows need not divide.

    The grid uses pl.cdiv, so a ragged final block is handled by Pallas
    (reads past the end are discarded on write).  When possible the tile is
    capped at half the rows so the grid has >= 2 steps and the "parallel"
    axis can shard across v7x's two TensorCores.
    """
    if rows <= sublane:
        return rows  # full-extent block is always a legal block shape
    budget_rows = max(sublane, _TARGET_BLOCK_BYTES // (lanes * itemsize))
    tile = max(sublane, (budget_rows // sublane) * sublane)
    if rows >= 2 * sublane:
        half = -(-rows // 2)                      # ceil(rows / 2)
        half = -(-half // sublane) * sublane      # round up to sublane multiple
        tile = min(tile, half)
    if tile >= rows:
        return rows
    return tile


def reshape_layer(x, filters, height, width):
    """Faithful ReshapeLayer.forward: metadata-only reshape (default path)."""
    return jnp.reshape(x, (-1, filters, height, width))


def reshape_layer_pallas(x, filters, height, width, *, tile_rows=None, donate=False):
    """ReshapeLayer.forward routed through a tiled Pallas identity copy.

    Opt-in physical copy; use `reshape_layer` when a copy is not required.
    Set donate=True only if the caller actually donates `x` (e.g. under a
    donating jit) -- otherwise the alias would just force a protective copy.
    """
    fhw = filters * height * width
    total = x.size
    assert total % fhw == 0, "input size must be divisible by filters*height*width"
    batch = total // fhw

    itemsize = jnp.dtype(x.dtype).itemsize
    sublane = _sublane_for_itemsize(itemsize)
    shape2d = _pick_2d_shape(total, sublane)
    if shape2d is None:
        # Element count not a multiple of 128: a Pallas copy would be nothing
        # but masked partial stores, and the reshape itself is metadata-only.
        return reshape_layer(x, filters, height, width)
    rows, lanes = shape2d

    if tile_rows is None:
        tile_rows = _pick_tile_rows(rows, lanes, itemsize, sublane)
    grid_rows = pl.cdiv(rows, tile_rows)

    # Lane-dense 2-D view of the contiguous buffer (row-major order preserved,
    # so element order matches torch's .view()).
    x2d = x.reshape(rows, lanes)

    call_kwargs = {}
    if donate:
        # True in-place identity under a donating jit.
        call_kwargs["input_output_aliases"] = {0: 0}

    out2d = pl.pallas_call(
        _copy_kernel,
        out_shape=jax.ShapeDtypeStruct((rows, lanes), x.dtype),
        grid_spec=pltpu.PrefetchScalarGridSpec(
            num_scalar_prefetch=0,
            grid=(grid_rows,),
            in_specs=[pl.BlockSpec((tile_rows, lanes), lambda i: (i, 0))],
            out_specs=pl.BlockSpec((tile_rows, lanes), lambda i: (i, 0)),
        ),
        cost_estimate=pl.CostEstimate(
            flops=0,
            transcendentals=0,
            bytes_accessed=2 * total * itemsize,
        ),
        compiler_params=pltpu.CompilerParams(
            # Row tiles are independent -> shard across both v7x TensorCores.
            dimension_semantics=("parallel",),
            vmem_limit_bytes=_vmem_limit_bytes(),
        ),
        **call_kwargs,
    )(x2d)

    # Metadata-only reshape to NCHW, same as torch .view(-1, F, H, W).
    return out2d.reshape(batch, filters, height, width)


if __name__ == "__main__":
    # ReshapeLayer(filters=4, height=16, width=16) applied to a (2, 1024) input
    # (e.g. the output of a linear layer in the GAN generator).
    filters, height, width = 4, 16, 16
    batch = 2

    key = jax.random.PRNGKey(0)
    k0, k1, k2 = jax.random.split(key, 3)
    x = jax.random.normal(k0, (batch, filters * height * width), dtype=jnp.float32)
    ref = jnp.reshape(x, (-1, filters, height, width))

    # Default path (what the module should compile to): metadata-only reshape.
    y_fast = jax.block_until_ready(reshape_layer(x, filters, height, width))

    # Opt-in Pallas path: lane-dense identity copy (2048 elems -> (8, 256)).
    y = jax.block_until_ready(reshape_layer_pallas(x, filters, height, width))
    # Donating variant (alias only applied when requested).
    y_don = jax.block_until_ready(
        reshape_layer_pallas(x, filters, height, width, donate=True))

    assert y.shape == (batch, filters, height, width)
    assert y.dtype == x.dtype
    assert bool(jnp.array_equal(y, ref))
    assert bool(jnp.array_equal(y_fast, ref))
    assert bool(jnp.array_equal(y_don, ref))

    # Ragged multi-step grid: (3, 8*32*32) f32 -> (24, 1024) view, tile_rows=16,
    # grid=(2,), last block partially out of bounds (handled by Pallas).
    f2, h2, w2 = 8, 32, 32
    x2 = jax.random.normal(k1, (3, f2 * h2 * w2), dtype=jnp.float32)
    y2 = jax.block_until_ready(reshape_layer_pallas(x2, f2, h2, w2))
    assert bool(jnp.array_equal(y2, jnp.reshape(x2, (-1, f2, h2, w2))))

    # bf16 path exercises the dtype-aware 16-row sublane alignment:
    # (4, 16*16*32) -> 32768 elems -> (16, 2048) lane-dense view.
    f3, h3, w3 = 16, 16, 32
    x3 = jax.random.normal(k2, (4, f3 * h3 * w3), dtype=jnp.float32).astype(jnp.bfloat16)
    y3 = jax.block_until_ready(reshape_layer_pallas(x3, f3, h3, w3))
    assert bool(jnp.array_equal(y3, jnp.reshape(x3, (-1, f3, h3, w3))))

    print("KERNEL_OK")
</pallas_src>

<mosaic_0001>
module attributes {stable_mosaic.version = 11 : i64} {
  func.func @_copy_kernel(%arg0: i32, %arg1: memref<8x256xf32, #tpu.memory_space<vmem>>, %arg2: memref<8x256xf32, #tpu.memory_space<vmem>>) attributes {dimension_semantics = [#tpu.dimension_semantics<parallel>], iteration_bounds = array<i64: 1>, scalar_prefetch = 0 : i64, scratch_operands = 0 : i64, tpu.core_type = #tpu.core_type<tc>, window_params = [{transform_indices = @transform_0, window_bounds = array<i64: 8, 256>}, {transform_indices = @transform_1, window_bounds = array<i64: 8, 256>}]} {
    %c0 = arith.constant 0 : index
    %c0_0 = arith.constant 0 : index
    %0 = vector.load %arg1[%c0, %c0_0] : memref<8x256xf32, #tpu.memory_space<vmem>>, vector<8x256xf32>
    %c0_1 = arith.constant 0 : index
    %c0_2 = arith.constant 0 : index
    %1 = vector.load %arg2[%c0_1, %c0_2] : memref<8x256xf32, #tpu.memory_space<vmem>>, vector<8x256xf32>
    tpu.vector_store %arg2[%c0_1, %c0_2], %0 {strides = array<i32>} : memref<8x256xf32, #tpu.memory_space<vmem>>, vector<8x256xf32>,
    return
  }
  func.func @transform_0(%arg0: i32) -> (i32, i32) {
    %c0_i32 = arith.constant 0 : i32
    %c0_i32_0 = arith.constant 0 : i32
    return %arg0, %c0_i32 : i32, i32
  }
  func.func @transform_1(%arg0: i32) -> (i32, i32) {
    %c0_i32 = arith.constant 0 : i32
    %c0_i32_0 = arith.constant 0 : i32
    return %arg0, %c0_i32 : i32, i32
  }
}

</mosaic_0001>

<bundles_post_ra>
// kernel: tpu_custom_call.1
= control target key start
LH: loop header
LB: loop body
LE: loop exit
PB: predicated region body
PF: predicated region fallthrough
CT: control target
= control target key end

     0   :  { %6 = vsyncpa [#allocation3], 0  ;;  %s126_s0 = inlined_call_operand.hbm [shape: f32[8,256], index: 0, kind: input, shape index: {}]   ;;  %s127_s1 = inlined_call_operand.hbm [shape: f32[8,256], index: 1, kind: output, shape index: {}]  }
   0x1   :  { %7 = vsyncpa [#allocation4], 0  ;;  %s90_s6 = smov [#allocation2]   ;;  %s42_s10 = scalar_lea.hbm %s126_s0, 256 }
   0x2   :  { %s14_s7 = sshll.u32 %s90_s6, 4  ;;  %p43_p0 = scmp.ne.s32.totalorder %s126_s0, %s42_s10  ;;  %s15_s7 = int_to_ptr.vmem [resolvable:$true] %s14_s7 }
   0x3   :  { %p46_p1 = scmp.lt.u32.totalorder %s42_s10, %s126_s0 }
   0x5   :  { %p48_p2 = pnand %p46_p1, %p43_p0 }
   0x7   :  { %51 = shalt.err (!%p48_p2)
}
   0x8   :  { %s52_s15 = scalar_lea.vmem %s15_s7, 256  ;;  %p57_p4 = scmp.lt.s32.totalorder %s15_s7, %s15_s7 }
   0x9   :  { %p53_p3 = scmp.ne.s32.totalorder %s15_s7, %s52_s15  ;;  %p58_p5 = scmp.lt.s32.totalorder %s52_s15, %s52_s15 }
   0xb   :  { %p59_p6 = por %p58_p5, %p57_p4 }
   0xd   :  { %p60_p7 = pnand %p59_p6, %p53_p3 }
   0xf   :  { %63 = shalt.err (!%p60_p7)
}
  0x10   :  { %17 = dma.hbm_to_vmem [thread:$0]  %s126_s0, 256, %s15_s7, [#allocation3]  }
  0x11   :  { %86 = dma.done.wait [#allocation3], 256  }
  0x12   :  { %87 = vsyncadd [#allocation3], 4294967040  ;;  %s91_s18 = smov [#allocation5]   ;;  %v21_v0 = vld [vmem:[#allocation2] sm:$0xff]  ;;  %v22_v1 = vld [vmem:[#allocation2 + $0x8] sm:$0xff] }
  0x13   :  { %s31_s19 = sshll.u32 %s91_s18, 4  ;;  %23 = vst [vmem:[#allocation5] sm:$0xff] %v21_v0  ;;  %24 = vst [vmem:[#allocation5 + $0x8] sm:$0xff] %v22_v1  ;;  %s32_s19 = int_to_ptr.vmem [resolvable:$true] %s31_s19 }
  0x14   :  { %s64_s20 = scalar_lea.vmem %s32_s19, 256  ;;  %p69_p9 = scmp.lt.s32.totalorder %s32_s19, %s32_s19 }
  0x15   :  { %p65_p8 = scmp.ne.s32.totalorder %s32_s19, %s64_s20  ;;  %p70_p10 = scmp.lt.s32.totalorder %s64_s20, %s64_s20 }
  0x17   :  { %p71_p11 = por %p70_p10, %p69_p9 }
  0x19   :  { %p72_p12 = pnand %p71_p11, %p65_p8 }
  0x1b   :  { %75 = shalt.err (!%p72_p12)
}
  0x1c   :  { %s76_s0 = scalar_lea.hbm %s127_s1, 256 }
  0x1d   :  { %p77_p13 = scmp.ne.s32.totalorder %s127_s1, %s76_s0  ;;  %p80_p0 = scmp.lt.u32.totalorder %s76_s0, %s127_s1 }
  0x1f   :  { %p82_p1 = pnand %p80_p0, %p77_p13 }
  0x21   :  { %85 = shalt.err (!%p82_p1)
}
  0x22   :  { %34 = dma.vmem_to_hbm [thread:$0]  %s32_s19, 256, %s127_s1, [#allocation4]  }
  0x23   :  { %88 = dma.done.wait [#allocation4], 256  }
  0x24   :  { %89 = vsyncadd [#allocation4], 4294967040 }
  0x25   :  { %38 = vsyncpa [#allocation3], 1 }
  0x26   :  { %39 = vsyncpa [#allocation4], 1 }

</bundles_post_ra>
